<compile_context>
chip_gen: v7x
topology: tpu7x:2x2x1
jax: 0.10.0
libtpu: 0.0.40
codegen_flags: <defaults>
</compile_context>

<pallas_src>
import functools

import jax
import jax.numpy as jnp
from jax import lax
from jax.experimental import pallas as pl
from jax.experimental.pallas import tpu as pltpu


def _fused_polyphase_bn_kernel(w_ref, p_ref, mask_ref, gamma_ref, beta_ref,
                               out_ref,
                               sum_scr, sq_scr, scale_scr, shift_scr,
                               *, n_valid, eps, n_par, cout):
    """Fused polyphase conv-transpose matmul + training-mode BatchNorm.

    grid = (2, n_tiles):
      phase 0: acc = W_big @ patches_tile; accumulate masked per-channel
               sum / sum-of-squares; on the last tile fold the stats into
               per-(parity, channel) scale / shift.
      phase 1: recompute acc (cheap, K'=16) and write acc * scale + shift.
    """
    phase = pl.program_id(0)
    t = pl.program_id(1)
    n_tiles = pl.num_programs(1)

    @pl.when((phase == 0) & (t == 0))
    def _init():
        sum_scr[...] = jnp.zeros_like(sum_scr)
        sq_scr[...] = jnp.zeros_like(sq_scr)
        # Phase 0 pins the output block index; it is revisited (not flushed)
        # by phase-1 tile 0 which fully overwrites it.  Zero it anyway so that
        # every visited output block always holds defined data.
        out_ref[...] = jnp.zeros_like(out_ref)

    @pl.when(phase == 0)
    def _stats():
        acc = jnp.dot(w_ref[...], p_ref[...],
                      preferred_element_type=jnp.float32)    # (n_par*cout, TM)
        mask = mask_ref[...]                                  # (n_par, TM) 0/1
        s_acc = jnp.zeros((cout, 1), jnp.float32)
        q_acc = jnp.zeros((cout, 1), jnp.float32)
        for par in range(n_par):                              # static loop
            a = acc[par * cout:(par + 1) * cout, :]           # (cout, TM)
            am = a * mask[par:par + 1, :]                     # invalid cols -> 0
            s_acc = s_acc + jnp.sum(am, axis=1, keepdims=True)
            q_acc = q_acc + jnp.sum(am * a, axis=1, keepdims=True)
        sum_scr[...] += s_acc
        sq_scr[...] += q_acc

    @pl.when((phase == 0) & (t == n_tiles - 1))
    def _finalize_stats():
        inv_m = 1.0 / n_valid
        mean = sum_scr[...] * inv_m
        var = jnp.maximum(sq_scr[...] * inv_m - mean * mean, 0.0)
        # TODO(synk): single-pass E[x^2]-E[x]^2 loses precision if |mean|>>std;
        # switch to a shifted/Welford update if that regime matters.
        scale = gamma_ref[...] * lax.rsqrt(var + eps)         # (cout, 1)
        shift = beta_ref[...] - mean * scale
        for par in range(n_par):                              # tile per parity row-group
            scale_scr[par * cout:(par + 1) * cout, :] = scale
            shift_scr[par * cout:(par + 1) * cout, :] = shift

    @pl.when(phase == 1)
    def _apply():
        acc = jnp.dot(w_ref[...], p_ref[...],
                      preferred_element_type=jnp.float32)
        out_ref[...] = acc * scale_scr[...] + shift_scr[...]


def dconv_forward(x, weight, bias, gamma, beta, *, stride, padding,
                  eps=1e-5, tm=2048):
    """x: (N, Cin, H, W); weight: (Cin, Cout, k, k) (PyTorch ConvTranspose2d
    layout); bias/gamma/beta: (Cout,).  Returns (N, Cout, Hout, Wout).

    `bias` is accepted for API parity but is mathematically cancelled by the
    training-mode BatchNorm that follows, so it never reaches the kernel.
    """
    del bias
    N, Cin, H, W = x.shape
    Cin_w, Cout, k, k2 = weight.shape
    assert Cin == Cin_w and k == k2
    s = int(stride)
    Hout = (H - 1) * s - 2 * padding + k
    Wout = (W - 1) * s - 2 * padding + k
    assert Hout > 0 and Wout > 0

    # Polyphase decomposition: output (oh, ow) = (s*qh + ph, s*qw + pw) draws
    # from input row ih = qh + d with kernel row kh = ph + padding - s*d.
    d_lo = -((k - 1 - padding) // s)          # = ceil((padding - k + 1) / s)
    d_hi = (padding + s - 1) // s             # = floor((padding + s - 1) / s)
    D = d_hi - d_lo + 1                       # footprint per axis (2 here)
    P = s * s
    Hq = -(-Hout // s)
    Wq = -(-Wout // s)
    Mq = N * Hq * Wq
    Kp = Cin * D * D

    # ---- compact im2col of the UN-dilated input, built directly in its final
    #      (K', Mq) layout (no zero dilation, no k*k inflation, no extra
    #      transpose pass over a big array) ----
    off = max(d_lo, 0)
    pad_lo = max(0, -d_lo)
    pad_hi_h = max(0, (Hq - 1) + d_hi - (H - 1))
    pad_hi_w = max(0, (Wq - 1) + d_hi - (W - 1))
    x_c = x.astype(jnp.bfloat16).transpose(1, 0, 2, 3)         # (Cin, N, H, W)
    x_p = jnp.pad(x_c, ((0, 0), (0, 0), (pad_lo, pad_hi_h), (pad_lo, pad_hi_w)))
    windows = [x_p[:, :, off + dh:off + dh + Hq, off + dw:off + dw + Wq]
               for dh in range(D) for dw in range(D)]          # (Cin, N, Hq, Wq)
    patches = jnp.stack(windows, axis=1).reshape(Kp, Mq)       # (K', Mq) bf16

    # ---- per-parity sub-kernels, flattened into one (P*Cout, K') weight ----
    w_big = jnp.zeros((s, s, Cout, Cin, D, D), jnp.float32)
    for ph in range(s):
        for pw in range(s):
            for dh in range(D):
                kh = ph + padding - s * (d_lo + dh)
                if not 0 <= kh < k:
                    continue
                for dw in range(D):
                    kw = pw + padding - s * (d_lo + dw)
                    if not 0 <= kw < k:
                        continue
                    w_big = w_big.at[ph, pw, :, :, dh, dw].set(
                        weight[:, :, kh, kw].T)
    w_mat = w_big.reshape(P * Cout, Kp).astype(jnp.bfloat16)

    # ---- per-parity validity mask (q-grid over-covers the odd parities) ----
    oh_ok = (jnp.arange(Hq)[None, :] * s + jnp.arange(s)[:, None]) < Hout  # (s, Hq)
    ow_ok = (jnp.arange(Wq)[None, :] * s + jnp.arange(s)[:, None]) < Wout  # (s, Wq)
    mask = oh_ok[:, None, None, :, None] & ow_ok[None, :, None, None, :]
    mask = jnp.broadcast_to(mask, (s, s, N, Hq, Wq)).reshape(P, Mq)
    mask = mask.astype(jnp.float32)

    # ---- lane-dense column tiling; per-step VMEM ~ 2*TM*(Kp*2+P*4+P*Cout*4)
    #      bytes (~0.7 MiB at TM=2048), independent of problem size ----
    TM = min(tm, -(-Mq // 128) * 128)
    Mq_pad = -(-Mq // TM) * TM
    n_tiles = Mq_pad // TM
    patches = jnp.pad(patches, ((0, 0), (0, Mq_pad - Mq)))
    mask = jnp.pad(mask, ((0, 0), (0, Mq_pad - Mq)))

    gamma2 = gamma.reshape(Cout, 1).astype(jnp.float32)
    beta2 = beta.reshape(Cout, 1).astype(jnp.float32)
    n_valid = float(N * Hout * Wout)

    out_big = pl.pallas_call(
        functools.partial(_fused_polyphase_bn_kernel, n_valid=n_valid, eps=eps,
                          n_par=P, cout=Cout),
        out_shape=jax.ShapeDtypeStruct((P * Cout, Mq_pad), jnp.float32),
        grid_spec=pltpu.PrefetchScalarGridSpec(
            num_scalar_prefetch=0,
            grid=(2, n_tiles),                                  # (phase, tile)
            in_specs=[
                pl.BlockSpec((P * Cout, Kp), lambda p, t: (0, 0)),   # weights
                pl.BlockSpec((Kp, TM), lambda p, t: (0, t)),         # patches
                # mask only feeds phase-0 stats; park it on its last block in
                # phase 1 so it is streamed exactly once.
                pl.BlockSpec((P, TM),
                             lambda p, t: (0, t * (1 - p) + (n_tiles - 1) * p)),
                pl.BlockSpec((Cout, 1), lambda p, t: (0, 0)),        # gamma
                pl.BlockSpec((Cout, 1), lambda p, t: (0, 0)),        # beta
            ],
            # phase 0 pins the output block (zeroed in-kernel, never flushed);
            # phase 1 streams the real blocks out, lane-dense.
            out_specs=pl.BlockSpec((P * Cout, TM), lambda p, t: (0, t * p)),
            scratch_shapes=[
                pltpu.VMEM((Cout, 1), jnp.float32),        # channel sum
                pltpu.VMEM((Cout, 1), jnp.float32),        # channel sum of sq
                pltpu.VMEM((P * Cout, 1), jnp.float32),    # BN scale (tiled)
                pltpu.VMEM((P * Cout, 1), jnp.float32),    # BN shift (tiled)
            ],
        ),
        # TODO(synk): on v7x, split the tile axis across both TensorCores with
        # per-core partial sum/sumsq and a tiny combine step.
        compiler_params=pltpu.CompilerParams(
            dimension_semantics=("arbitrary", "arbitrary")),
    )(w_mat, patches, mask, gamma2, beta2)

    # Pixel-shuffle interleave of the parity classes back to NCHW.
    out = (out_big[:, :Mq].reshape(s, s, Cout, N, Hq, Wq)
           .transpose(3, 2, 4, 0, 5, 1)
           .reshape(N, Cout, Hq * s, Wq * s)[:, :, :Hout, :Wout])
    return out


def _reference(x, weight, bias, gamma, beta, *, stride, padding, eps=1e-5):
    """Pure-JAX reference (XLA conv + training-mode BN) for sanity checking."""
    k = weight.shape[-1]
    p = k - 1 - padding
    y = lax.conv_general_dilated(
        x, weight[:, :, ::-1, ::-1],
        window_strides=(1, 1),
        padding=((p, p), (p, p)),
        lhs_dilation=(stride, stride),
        dimension_numbers=("NCHW", "IOHW", "NCHW"),
    ) + bias.reshape(1, -1, 1, 1)
    mean = y.mean(axis=(0, 2, 3), keepdims=True)
    var = ((y - mean) ** 2).mean(axis=(0, 2, 3), keepdims=True)
    return gamma.reshape(1, -1, 1, 1) * (y - mean) * lax.rsqrt(var + eps) \
        + beta.reshape(1, -1, 1, 1)


if __name__ == "__main__":
    planes, outplanes, kernel_size, stride, padding = 4, 8, 3, 2, 1
    N, H, W = 2, 16, 16

    key = jax.random.PRNGKey(0)
    kx, kw, kb, kg, kbeta = jax.random.split(key, 5)
    x = jax.random.normal(kx, (N, planes, H, W), dtype=jnp.float32)
    # ConvTranspose2d weight layout: (in_channels, out_channels, kH, kW)
    weight = 0.1 * jax.random.normal(
        kw, (planes, outplanes, kernel_size, kernel_size), dtype=jnp.float32)
    bias = 0.1 * jax.random.normal(kb, (outplanes,), dtype=jnp.float32)
    gamma = 1.0 + 0.1 * jax.random.normal(kg, (outplanes,), dtype=jnp.float32)
    beta = 0.1 * jax.random.normal(kbeta, (outplanes,), dtype=jnp.float32)

    out = dconv_forward(x, weight, bias, gamma, beta,
                        stride=stride, padding=padding)
    out = jax.block_until_ready(out)

    ref = _reference(x, weight, bias, gamma, beta,
                     stride=stride, padding=padding)
    Hout = (H - 1) * stride - 2 * padding + kernel_size
    Wout = (W - 1) * stride - 2 * padding + kernel_size
    assert out.shape == (N, outplanes, Hout, Wout)
    # bf16 streaming of x/W (f32 accumulation) -> ~1e-3-level relative error.
    assert jnp.allclose(out, ref, rtol=2e-2, atol=2e-2), "mismatch vs reference"

    print("KERNEL_OK")
</pallas_src>

<mosaic_0001>
module attributes {stable_mosaic.version = 11 : i64} {
  func.func @_fused_polyphase_bn_kernel(%arg0: i32, %arg1: i32, %arg2: memref<32x16xbf16, #tpu.memory_space<vmem>>, %arg3: memref<16x512xbf16, #tpu.memory_space<vmem>>, %arg4: memref<4x512xf32, #tpu.memory_space<vmem>>, %arg5: memref<8x1xf32, #tpu.memory_space<vmem>>, %arg6: memref<8x1xf32, #tpu.memory_space<vmem>>, %arg7: memref<32x512xf32, #tpu.memory_space<vmem>>, %arg8: memref<8x1xf32, #tpu.memory_space<vmem>>, %arg9: memref<8x1xf32, #tpu.memory_space<vmem>>, %arg10: memref<32x1xf32, #tpu.memory_space<vmem>>, %arg11: memref<32x1xf32, #tpu.memory_space<vmem>>) attributes {dimension_semantics = [#tpu.dimension_semantics<arbitrary>, #tpu.dimension_semantics<arbitrary>], iteration_bounds = array<i64: 2, 1>, scalar_prefetch = 0 : i64, scratch_operands = 4 : i64, tpu.core_type = #tpu.core_type<tc>, window_params = [{pipeline_mode = #tpu.pipeline_mode<synchronous>, transform_indices = @transform_0, window_bounds = array<i64: 32, 16>}, {transform_indices = @transform_1, window_bounds = array<i64: 16, 512>}, {transform_indices = @transform_2, window_bounds = array<i64: 4, 512>}, {pipeline_mode = #tpu.pipeline_mode<synchronous>, transform_indices = @transform_3, window_bounds = array<i64: 8, 1>}, {pipeline_mode = #tpu.pipeline_mode<synchronous>, transform_indices = @transform_4, window_bounds = array<i64: 8, 1>}, {transform_indices = @transform_5, window_bounds = array<i64: 32, 512>}]} {
    %c0_i32 = arith.constant 0 : i32
    %0 = arith.cmpi eq, %arg0, %c0_i32 : i32
    %c0_i32_0 = arith.constant 0 : i32
    %1 = arith.cmpi eq, %arg1, %c0_i32_0 : i32
    %2 = arith.andi %0, %1 : i1
    %3 = arith.extui %2 : i1 to i32
    %c0_i32_1 = arith.constant 0 : i32
    %4 = arith.cmpi ne, %3, %c0_i32_1 : i32
    scf.if %4 {
      %cst = arith.constant 0.000000e+00 : f32
      %16 = vector.broadcast %cst : f32 to vector<8x1xf32>
      %c0 = arith.constant 0 : index
      %c0_8 = arith.constant 0 : index
      %17 = vector.load %arg8[%c0, %c0_8] : memref<8x1xf32, #tpu.memory_space<vmem>>, vector<8x1xf32>
      tpu.vector_store %arg8[%c0, %c0_8], %16 {strides = array<i32>} : memref<8x1xf32, #tpu.memory_space<vmem>>, vector<8x1xf32>,
      %cst_9 = arith.constant 0.000000e+00 : f32
      %18 = vector.broadcast %cst_9 : f32 to vector<8x1xf32>
      %c0_10 = arith.constant 0 : index
      %c0_11 = arith.constant 0 : index
      %19 = vector.load %arg9[%c0_10, %c0_11] : memref<8x1xf32, #tpu.memory_space<vmem>>, vector<8x1xf32>
      tpu.vector_store %arg9[%c0_10, %c0_11], %18 {strides = array<i32>} : memref<8x1xf32, #tpu.memory_space<vmem>>, vector<8x1xf32>,
      %cst_12 = arith.constant 0.000000e+00 : f32
      %20 = vector.broadcast %cst_12 : f32 to vector<32x512xf32>
      %c0_13 = arith.constant 0 : index
      %c0_14 = arith.constant 0 : index
      %21 = vector.load %arg7[%c0_13, %c0_14] : memref<32x512xf32, #tpu.memory_space<vmem>>, vector<32x512xf32>
      tpu.vector_store %arg7[%c0_13, %c0_14], %20 {strides = array<i32>} : memref<32x512xf32, #tpu.memory_space<vmem>>, vector<32x512xf32>,
    } else {
    }
    %c0_i32_2 = arith.constant 0 : i32
    %5 = arith.cmpi eq, %arg0, %c0_i32_2 : i32
    %6 = arith.extui %5 : i1 to i32
    %c0_i32_3 = arith.constant 0 : i32
    %7 = arith.cmpi ne, %6, %c0_i32_3 : i32
    scf.if %7 {
      %c0 = arith.constant 0 : index
      %c0_8 = arith.constant 0 : index
      %16 = vector.load %arg2[%c0, %c0_8] : memref<32x16xbf16, #tpu.memory_space<vmem>>, vector<32x16xbf16>
      %c0_9 = arith.constant 0 : index
      %c0_10 = arith.constant 0 : index
      %17 = vector.load %arg3[%c0_9, %c0_10] : memref<16x512xbf16, #tpu.memory_space<vmem>>, vector<16x512xbf16>
      %cst = arith.constant dense<0.000000e+00> : vector<32x512xf32>
      %18 = tpu.matmul %16, %17, %cst {dimension_numbers = #tpu.dot_dimension_numbers<[1], [0], [0], [1], [0, 0, 1, 1], [], []>} : vector<32x16xbf16>, vector<16x512xbf16>, vector<32x512xf32> -> vector<32x512xf32>
      %c0_11 = arith.constant 0 : index
      %c0_12 = arith.constant 0 : index
      %19 = vector.load %arg4[%c0_11, %c0_12] : memref<4x512xf32, #tpu.memory_space<vmem>>, vector<4x512xf32>
      %cst_13 = arith.constant 0.000000e+00 : f32
      %20 = vector.broadcast %cst_13 : f32 to vector<8x1xf32>
      %cst_14 = arith.constant 0.000000e+00 : f32
      %21 = vector.broadcast %cst_14 : f32 to vector<8x1xf32>
      %22 = vector.extract_strided_slice %18 {offsets = [0, 0], sizes = [8, 512], strides = [1, 1]} : vector<32x512xf32> to vector<8x512xf32>
      %23 = vector.extract_strided_slice %19 {offsets = [0, 0], sizes = [1, 512], strides = [1, 1]} : vector<4x512xf32> to vector<1x512xf32>
      %24 = vector.broadcast %23 : vector<1x512xf32> to vector<8x512xf32>
      %25 = arith.mulf %22, %24 : vector<8x512xf32>
      %cst_15 = arith.constant dense<0.000000e+00> : vector<8xf32>
      %26 = vector.multi_reduction <add>, %25, %cst_15 [1] : vector<8x512xf32> to vector<8xf32>
      %27 = vector.shape_cast %26 : vector<8xf32> to vector<8x1xf32>
      %28 = arith.addf %20, %27 : vector<8x1xf32>
      %29 = arith.mulf %25, %22 : vector<8x512xf32>
      %cst_16 = arith.constant dense<0.000000e+00> : vector<8xf32>
      %30 = vector.multi_reduction <add>, %29, %cst_16 [1] : vector<8x512xf32> to vector<8xf32>
      %31 = vector.shape_cast %30 : vector<8xf32> to vector<8x1xf32>
      %32 = arith.addf %21, %31 : vector<8x1xf32>
      %33 = vector.extract_strided_slice %18 {offsets = [8, 0], sizes = [8, 512], strides = [1, 1]} : vector<32x512xf32> to vector<8x512xf32>
      %34 = vector.extract_strided_slice %19 {offsets = [1, 0], sizes = [1, 512], strides = [1, 1]} : vector<4x512xf32> to vector<1x512xf32>
      %35 = vector.broadcast %34 : vector<1x512xf32> to vector<8x512xf32>
      %36 = arith.mulf %33, %35 : vector<8x512xf32>
      %cst_17 = arith.constant dense<0.000000e+00> : vector<8xf32>
      %37 = vector.multi_reduction <add>, %36, %cst_17 [1] : vector<8x512xf32> to vector<8xf32>
      %38 = vector.shape_cast %37 : vector<8xf32> to vector<8x1xf32>
      %39 = arith.addf %28, %38 : vector<8x1xf32>
      %40 = arith.mulf %36, %33 : vector<8x512xf32>
      %cst_18 = arith.constant dense<0.000000e+00> : vector<8xf32>
      %41 = vector.multi_reduction <add>, %40, %cst_18 [1] : vector<8x512xf32> to vector<8xf32>
      %42 = vector.shape_cast %41 : vector<8xf32> to vector<8x1xf32>
      %43 = arith.addf %32, %42 : vector<8x1xf32>
      %44 = vector.extract_strided_slice %18 {offsets = [16, 0], sizes = [8, 512], strides = [1, 1]} : vector<32x512xf32> to vector<8x512xf32>
      %45 = vector.extract_strided_slice %19 {offsets = [2, 0], sizes = [1, 512], strides = [1, 1]} : vector<4x512xf32> to vector<1x512xf32>
      %46 = vector.broadcast %45 : vector<1x512xf32> to vector<8x512xf32>
      %47 = arith.mulf %44, %46 : vector<8x512xf32>
      %cst_19 = arith.constant dense<0.000000e+00> : vector<8xf32>
      %48 = vector.multi_reduction <add>, %47, %cst_19 [1] : vector<8x512xf32> to vector<8xf32>
      %49 = vector.shape_cast %48 : vector<8xf32> to vector<8x1xf32>
      %50 = arith.addf %39, %49 : vector<8x1xf32>
      %51 = arith.mulf %47, %44 : vector<8x512xf32>
      %cst_20 = arith.constant dense<0.000000e+00> : vector<8xf32>
      %52 = vector.multi_reduction <add>, %51, %cst_20 [1] : vector<8x512xf32> to vector<8xf32>
      %53 = vector.shape_cast %52 : vector<8xf32> to vector<8x1xf32>
      %54 = arith.addf %43, %53 : vector<8x1xf32>
      %55 = vector.extract_strided_slice %18 {offsets = [24, 0], sizes = [8, 512], strides = [1, 1]} : vector<32x512xf32> to vector<8x512xf32>
      %56 = vector.extract_strided_slice %19 {offsets = [3, 0], sizes = [1, 512], strides = [1, 1]} : vector<4x512xf32> to vector<1x512xf32>
      %57 = vector.broadcast %56 : vector<1x512xf32> to vector<8x512xf32>
      %58 = arith.mulf %55, %57 : vector<8x512xf32>
      %cst_21 = arith.constant dense<0.000000e+00> : vector<8xf32>
      %59 = vector.multi_reduction <add>, %58, %cst_21 [1] : vector<8x512xf32> to vector<8xf32>
      %60 = vector.shape_cast %59 : vector<8xf32> to vector<8x1xf32>
      %61 = arith.addf %50, %60 : vector<8x1xf32>
      %62 = arith.mulf %58, %55 : vector<8x512xf32>
      %cst_22 = arith.constant dense<0.000000e+00> : vector<8xf32>
      %63 = vector.multi_reduction <add>, %62, %cst_22 [1] : vector<8x512xf32> to vector<8xf32>
      %64 = vector.shape_cast %63 : vector<8xf32> to vector<8x1xf32>
      %65 = arith.addf %54, %64 : vector<8x1xf32>
      %c0_23 = arith.constant 0 : index
      %c0_24 = arith.constant 0 : index
      %66 = vector.load %arg8[%c0_23, %c0_24] : memref<8x1xf32, #tpu.memory_space<vmem>>, vector<8x1xf32>
      %67 = arith.addf %66, %61 : vector<8x1xf32>
      %c0_25 = arith.constant 0 : index
      %c0_26 = arith.constant 0 : index
      %68 = vector.load %arg8[%c0_25, %c0_26] : memref<8x1xf32, #tpu.memory_space<vmem>>, vector<8x1xf32>
      tpu.vector_store %arg8[%c0_25, %c0_26], %67 {strides = array<i32>} : memref<8x1xf32, #tpu.memory_space<vmem>>, vector<8x1xf32>,
      %c0_27 = arith.constant 0 : index
      %c0_28 = arith.constant 0 : index
      %69 = vector.load %arg9[%c0_27, %c0_28] : memref<8x1xf32, #tpu.memory_space<vmem>>, vector<8x1xf32>
      %70 = arith.addf %69, %65 : vector<8x1xf32>
      %c0_29 = arith.constant 0 : index
      %c0_30 = arith.constant 0 : index
      %71 = vector.load %arg9[%c0_29, %c0_30] : memref<8x1xf32, #tpu.memory_space<vmem>>, vector<8x1xf32>
      tpu.vector_store %arg9[%c0_29, %c0_30], %70 {strides = array<i32>} : memref<8x1xf32, #tpu.memory_space<vmem>>, vector<8x1xf32>,
    } else {
    }
    %c0_i32_4 = arith.constant 0 : i32
    %8 = arith.cmpi eq, %arg0, %c0_i32_4 : i32
    %c0_i32_5 = arith.constant 0 : i32
    %9 = arith.cmpi eq, %arg1, %c0_i32_5 : i32
    %10 = arith.andi %8, %9 : i1
    %11 = arith.extui %10 : i1 to i32
    %c0_i32_6 = arith.constant 0 : i32
    %12 = arith.cmpi ne, %11, %c0_i32_6 : i32
    scf.if %12 {
      %c0 = arith.constant 0 : index
      %c0_8 = arith.constant 0 : index
      %16 = vector.load %arg8[%c0, %c0_8] : memref<8x1xf32, #tpu.memory_space<vmem>>, vector<8x1xf32>
      %cst = arith.constant 5.20291389E-4 : f32
      %17 = vector.broadcast %cst : f32 to vector<8x1xf32>
      %18 = arith.mulf %16, %17 : vector<8x1xf32>
      %c0_9 = arith.constant 0 : index
      %c0_10 = arith.constant 0 : index
      %19 = vector.load %arg9[%c0_9, %c0_10] : memref<8x1xf32, #tpu.memory_space<vmem>>, vector<8x1xf32>
      %cst_11 = arith.constant 5.20291389E-4 : f32
      %20 = vector.broadcast %cst_11 : f32 to vector<8x1xf32>
      %21 = arith.mulf %19, %20 : vector<8x1xf32>
      %22 = arith.mulf %18, %18 : vector<8x1xf32>
      %23 = arith.subf %21, %22 : vector<8x1xf32>
      %cst_12 = arith.constant 0.000000e+00 : f32
      %24 = vector.broadcast %cst_12 : f32 to vector<8x1xf32>
      %25 = arith.maximumf %23, %24 : vector<8x1xf32>
      %c0_13 = arith.constant 0 : index
      %c0_14 = arith.constant 0 : index
      %26 = vector.load %arg5[%c0_13, %c0_14] : memref<8x1xf32, #tpu.memory_space<vmem>>, vector<8x1xf32>
      %cst_15 = arith.constant 9.99999974E-6 : f32
      %27 = vector.broadcast %cst_15 : f32 to vector<8x1xf32>
      %28 = arith.addf %25, %27 : vector<8x1xf32>
      %29 = math.rsqrt %28 : vector<8x1xf32>
      %30 = arith.mulf %26, %29 : vector<8x1xf32>
      %c0_16 = arith.constant 0 : index
      %c0_17 = arith.constant 0 : index
      %31 = vector.load %arg6[%c0_16, %c0_17] : memref<8x1xf32, #tpu.memory_space<vmem>>, vector<8x1xf32>
      %32 = arith.mulf %18, %30 : vector<8x1xf32>
      %33 = arith.subf %31, %32 : vector<8x1xf32>
      %c0_18 = arith.constant 0 : index
      %c0_19 = arith.constant 0 : index
      %34 = vector.load %arg10[%c0_18, %c0_19] : memref<32x1xf32, #tpu.memory_space<vmem>>, vector<8x1xf32>
      tpu.vector_store %arg10[%c0_18, %c0_19], %30 {strides = array<i32>} : memref<32x1xf32, #tpu.memory_space<vmem>>, vector<8x1xf32>,
      %c0_20 = arith.constant 0 : index
      %c0_21 = arith.constant 0 : index
      %35 = vector.load %arg11[%c0_20, %c0_21] : memref<32x1xf32, #tpu.memory_space<vmem>>, vector<8x1xf32>
      tpu.vector_store %arg11[%c0_20, %c0_21], %33 {strides = array<i32>} : memref<32x1xf32, #tpu.memory_space<vmem>>, vector<8x1xf32>,
      %c8 = arith.constant 8 : index
      %c0_22 = arith.constant 0 : index
      %36 = vector.load %arg10[%c8, %c0_22] : memref<32x1xf32, #tpu.memory_space<vmem>>, vector<8x1xf32>
      tpu.vector_store %arg10[%c8, %c0_22], %30 {strides = array<i32>} : memref<32x1xf32, #tpu.memory_space<vmem>>, vector<8x1xf32>,
      %c8_23 = arith.constant 8 : index
      %c0_24 = arith.constant 0 : index
      %37 = vector.load %arg11[%c8_23, %c0_24] : memref<32x1xf32, #tpu.memory_space<vmem>>, vector<8x1xf32>
      tpu.vector_store %arg11[%c8_23, %c0_24], %33 {strides = array<i32>} : memref<32x1xf32, #tpu.memory_space<vmem>>, vector<8x1xf32>,
      %c16 = arith.constant 16 : index
      %c0_25 = arith.constant 0 : index
      %38 = vector.load %arg10[%c16, %c0_25] : memref<32x1xf32, #tpu.memory_space<vmem>>, vector<8x1xf32>
      tpu.vector_store %arg10[%c16, %c0_25], %30 {strides = array<i32>} : memref<32x1xf32, #tpu.memory_space<vmem>>, vector<8x1xf32>,
      %c16_26 = arith.constant 16 : index
      %c0_27 = arith.constant 0 : index
      %39 = vector.load %arg11[%c16_26, %c0_27] : memref<32x1xf32, #tpu.memory_space<vmem>>, vector<8x1xf32>
      tpu.vector_store %arg11[%c16_26, %c0_27], %33 {strides = array<i32>} : memref<32x1xf32, #tpu.memory_space<vmem>>, vector<8x1xf32>,
      %c24 = arith.constant 24 : index
      %c0_28 = arith.constant 0 : index
      %40 = vector.load %arg10[%c24, %c0_28] : memref<32x1xf32, #tpu.memory_space<vmem>>, vector<8x1xf32>
      tpu.vector_store %arg10[%c24, %c0_28], %30 {strides = array<i32>} : memref<32x1xf32, #tpu.memory_space<vmem>>, vector<8x1xf32>,
      %c24_29 = arith.constant 24 : index
      %c0_30 = arith.constant 0 : index
      %41 = vector.load %arg11[%c24_29, %c0_30] : memref<32x1xf32, #tpu.memory_space<vmem>>, vector<8x1xf32>
      tpu.vector_store %arg11[%c24_29, %c0_30], %33 {strides = array<i32>} : memref<32x1xf32, #tpu.memory_space<vmem>>, vector<8x1xf32>,
    } else {
    }
    %c1_i32 = arith.constant 1 : i32
    %13 = arith.cmpi eq, %arg0, %c1_i32 : i32
    %14 = arith.extui %13 : i1 to i32
    %c0_i32_7 = arith.constant 0 : i32
    %15 = arith.cmpi ne, %14, %c0_i32_7 : i32
    scf.if %15 {
      %c0 = arith.constant 0 : index
      %c0_8 = arith.constant 0 : index
      %16 = vector.load %arg2[%c0, %c0_8] : memref<32x16xbf16, #tpu.memory_space<vmem>>, vector<32x16xbf16>
      %c0_9 = arith.constant 0 : index
      %c0_10 = arith.constant 0 : index
      %17 = vector.load %arg3[%c0_9, %c0_10] : memref<16x512xbf16, #tpu.memory_space<vmem>>, vector<16x512xbf16>
      %cst = arith.constant dense<0.000000e+00> : vector<32x512xf32>
      %18 = tpu.matmul %16, %17, %cst {dimension_numbers = #tpu.dot_dimension_numbers<[1], [0], [0], [1], [0, 0, 1, 1], [], []>} : vector<32x16xbf16>, vector<16x512xbf16>, vector<32x512xf32> -> vector<32x512xf32>
      %c0_11 = arith.constant 0 : index
      %c0_12 = arith.constant 0 : index
      %19 = vector.load %arg10[%c0_11, %c0_12] : memref<32x1xf32, #tpu.memory_space<vmem>>, vector<32x1xf32>
      %20 = vector.broadcast %19 : vector<32x1xf32> to vector<32x512xf32>
      %21 = arith.mulf %18, %20 : vector<32x512xf32>
      %c0_13 = arith.constant 0 : index
      %c0_14 = arith.constant 0 : index
      %22 = vector.load %arg11[%c0_13, %c0_14] : memref<32x1xf32, #tpu.memory_space<vmem>>, vector<32x1xf32>
      %23 = vector.broadcast %22 : vector<32x1xf32> to vector<32x512xf32>
      %24 = arith.addf %21, %23 : vector<32x512xf32>
      %c0_15 = arith.constant 0 : index
      %c0_16 = arith.constant 0 : index
      %25 = vector.load %arg7[%c0_15, %c0_16] : memref<32x512xf32, #tpu.memory_space<vmem>>, vector<32x512xf32>
      tpu.vector_store %arg7[%c0_15, %c0_16], %24 {strides = array<i32>} : memref<32x512xf32, #tpu.memory_space<vmem>>, vector<32x512xf32>,
    } else {
    }
    return
  }
  func.func @transform_0(%arg0: i32, %arg1: i32) -> (i32, i32) {
    %c0_i32 = arith.constant 0 : i32
    %c0_i32_0 = arith.constant 0 : i32
    %c0_i32_1 = arith.constant 0 : i32
    return %c0_i32, %c0_i32_0 : i32, i32
  }
  func.func @transform_1(%arg0: i32, %arg1: i32) -> (i32, i32) {
    %c0_i32 = arith.constant 0 : i32
    %c0_i32_0 = arith.constant 0 : i32
    return %c0_i32, %arg1 : i32, i32
  }
  func.func @transform_2(%arg0: i32, %arg1: i32) -> (i32, i32) {
    %c1_i32 = arith.constant 1 : i32
    %0 = arith.subi %c1_i32, %arg0 : i32
    %1 = arith.muli %arg1, %0 : i32
    %c0_i32 = arith.constant 0 : i32
    %2 = arith.muli %c0_i32, %arg0 : i32
    %3 = arith.addi %1, %2 : i32
    %c0_i32_0 = arith.constant 0 : i32
    %c0_i32_1 = arith.constant 0 : i32
    return %c0_i32_0, %3 : i32, i32
  }
  func.func @transform_3(%arg0: i32, %arg1: i32) -> (i32, i32) {
    %c0_i32 = arith.constant 0 : i32
    %c0_i32_0 = arith.constant 0 : i32
    %c0_i32_1 = arith.constant 0 : i32
    return %c0_i32, %c0_i32_0 : i32, i32
  }
  func.func @transform_4(%arg0: i32, %arg1: i32) -> (i32, i32) {
    %c0_i32 = arith.constant 0 : i32
    %c0_i32_0 = arith.constant 0 : i32
    %c0_i32_1 = arith.constant 0 : i32
    return %c0_i32, %c0_i32_0 : i32, i32
  }
  func.func @transform_5(%arg0: i32, %arg1: i32) -> (i32, i32) {
    %0 = arith.muli %arg1, %arg0 : i32
    %c0_i32 = arith.constant 0 : i32
    %c0_i32_0 = arith.constant 0 : i32
    return %c0_i32, %0 : i32, i32
  }
}

</mosaic_0001>

<bundles_post_ra>
// kernel: tpu_custom_call.1
= control target key start
LH: loop header
LB: loop body
LE: loop exit
PB: predicated region body
PF: predicated region fallthrough
CT: control target
= control target key end

     0   :  { %10 = vsyncpa [#allocation7], 0  ;;  %s1400_s0 = inlined_call_operand.vmem [shape: bf16[32,16], index: 0, kind: input, shape index: {}]   ;;  %s1401_s1 = inlined_call_operand.vmem [shape: bf16[16,512], index: 1, kind: input, shape index: {}]   ;;  %s1402_s2 = inlined_call_operand.vmem [shape: f32[4,512], index: 2, kind: input, shape index: {}]   ;;  %s1403_s3 = inlined_call_operand.vmem [shape: f32[8,1], index: 3, kind: input, shape index: {}]   ;;  %s1404_s4 = inlined_call_operand.vmem [shape: f32[8,1], index: 4, kind: input, shape index: {}]   ;;  %s1405_s5 = inlined_call_operand.hbm [shape: f32[32,512], index: 5, kind: output, shape index: {}]  }
   0x1   :  { %12 = vsyncpa [#allocation7 + $0x1], 0  ;;  %s1254_s18 = smov 0   ;;  %s1256_s19 = smov 0  }
   0x2   :  { %s1258_s20 = smov 0  }
   0x3 LB: > { %s1068_s21 = sadd.s32 4294967295, %s1216_s20   ;;  %s1069_s22 = sadd.s32 4294967294, %s1216_s20   ;;  %s1216_s20 = sphi %s1258_s20, %s18_s20   ;;  %s1212_s19 = sphi %s1256_s19, %s1408_s19   ;;  %s1208_s18 = sphi %s1254_s18, %s1407_s18  }
   0x4   : > { %s30_s23 = sadd.s32 1, %s1212_s19  ;;  %p1074_p0 = scmp.ge.s32.totalorder %s1216_s20, 1 }
   0x5   : > { %p32_p1 = scmp.ge.s32.totalorder %s30_s23, 2  ;;  %p224_p2 = scmp.lt.s32.totalorder %s1216_s20, 3 }
   0x7   : > { %s1410_s23 = smov (%p32_p1, %s30_s23), 0  ;;  %p225_p3 = pnand %p1074_p0, %p224_p2 }
   0x8   : > { %p278_p4 = scmp.eq.s32.totalorder (!%p225_p3), %s1208_s18, 0 }
   0x9   : > { %228 = sbr.rel (%p225_p3) target bundleno = 710 (0x2c6), region = 40 }
  0x10   : > { %283 = sbr.rel (!%p278_p4) target bundleno = 26 (0x1a), region = 44  ;;  %vm284_vm0 = vcmask (%p278_p4), 7168   ;;  %v1218_v0 = vmov (%p278_p4), 0.0  }
  0x11   : > { %285 = vst.msk [vmem:[#allocation2] sm:$0xff] (%p278_p4), %vm284_vm0, %v1218_v0  ;;  %286 = vst.msk [vmem:[#allocation3] sm:$0xff] (%p278_p4), %vm284_vm0, %v1218_v0 }
  0x12   : > { %287 = vst [vmem:[#allocation6] sm:$0xff] (%p278_p4), %v1218_v0  ;;  %288 = vst [vmem:[#allocation6 + $0x8] sm:$0xff] (%p278_p4), %v1218_v0 }
  0x13   : > { %289 = vst [vmem:[#allocation6 + $0x10] sm:$0xff] (%p278_p4), %v1218_v0  ;;  %290 = vst [vmem:[#allocation6 + $0x18] sm:$0xff] (%p278_p4), %v1218_v0 }
  0x14   : > { %291 = vst [vmem:[#allocation6 + $0x20] sm:$0xff] (%p278_p4), %v1218_v0  ;;  %292 = vst [vmem:[#allocation6 + $0x28] sm:$0xff] (%p278_p4), %v1218_v0 }
  0x15   : > { %293 = vst [vmem:[#allocation6 + $0x30] sm:$0xff] (%p278_p4), %v1218_v0  ;;  %294 = vst [vmem:[#allocation6 + $0x38] sm:$0xff] (%p278_p4), %v1218_v0 }
  0x16   : > { %295 = vst [vmem:[#allocation6 + $0x40] sm:$0xff] (%p278_p4), %v1218_v0  ;;  %296 = vst [vmem:[#allocation6 + $0x48] sm:$0xff] (%p278_p4), %v1218_v0 }
  0x17   : > { %297 = vst [vmem:[#allocation6 + $0x50] sm:$0xff] %v1218_v0  ;;  %298 = vst [vmem:[#allocation6 + $0x58] sm:$0xff] %v1218_v0 }
  0x18   : > { %299 = vst [vmem:[#allocation6 + $0x60] sm:$0xff] %v1218_v0  ;;  %300 = vst [vmem:[#allocation6 + $0x68] sm:$0xff] %v1218_v0 }
  0x19   : > { %301 = vst [vmem:[#allocation6 + $0x70] sm:$0xff] %v1218_v0  ;;  %302 = vst [vmem:[#allocation6 + $0x78] sm:$0xff] %v1218_v0 }
  0x1a PF: > { %p1076_p5 = scmp.ne.s32.totalorder %s1208_s18, 0 }
  0x1b   : > { %v1144_v1 = vld [vmem:[%s1401_s1 + $0x4] ss:$16 sps:$4 sm:$0xff] (!%p1076_p5)   ;;  %v1146_v2 = vld [vmem:[%s1401_s1 + $0xc] ss:$16 sps:$4 sm:$0xff] (!%p1076_p5)   ;;  %v1219_v3 = vmov (!%p1076_p5), 0   ;;  %vm344_vm1 = vcmask (!%p1076_p5), 130048   ;;  %v461_v8 = vlaneseq (!%p1076_p5) }
  0x1c   : > { %305 = sbr.rel (%p1076_p5) target bundleno = 416 (0x1a0), region = 48  ;;  %383 = vmatprep.mubr.bf16.mxu0 (!%p1076_p5), %v1219_v3  ;;  %436 = vmatprep.mubr.bf16.mxu1 (!%p1076_p5), %v1219_v3  ;;  %v1148_v4 = vld [vmem:[%s1401_s1] ss:$16 sps:$4 sm:$0xff] (!%p1076_p5)   ;;  %v1149_v5 = vld [vmem:[%s1401_s1 + $0x8] ss:$16 sps:$4 sm:$0xff] (!%p1076_p5)   ;;  %vm687_vm2 = vcmask (!%p1076_p5), 7168  }
  0x1d   : > { %351 = vmatprep.subr.bf16.mxu0 (!%p1076_p5), %v1144_v1  ;;  %404 = vmatprep.subr.bf16.mxu1 (!%p1076_p5), %v1146_v2  ;;  %v1150_v6 = vld [vmem:[%s1400_s0] sm:$0xff] (!%p1076_p5)   ;;  %v1151_v7 = vld [vmem:[%s1400_s0 + $0x8] sm:$0xff] (!%p1076_p5)   ;;  %v462_v9 = vshrl.u32 (!%p1076_p5), %v461_v8, 7 }
  0x1e   : > { %352 = vmatpush1.bf16.msra.mxu0 (!%p1076_p5), %v1148_v4  ;;  %405 = vmatpush1.bf16.msra.mxu1 (!%p1076_p5), %v1149_v5  ;;  %v1301_v11 = vld [vmem:[%s1402_s2] sm:$0xff] (!%p1076_p5)  ;;  %v458_v12 = vld [vmem:[%s1402_s2 + $0x8] sm:$0xff] (!%p1076_p5) }
  0x1f   : > { %v463_v10 = vsub.s32 (!%p1076_p5), 0, %v462_v9  ;;  %v467_v13 = vsub.s32 (!%p1076_p5), 4, %v462_v9  ;;  %v519_v14 = vsub.s32 (!%p1076_p5), 1, %v462_v9  ;;  %v523_v15 = vsub.s32 (!%p1076_p5), 5, %v462_v9 }
  0x20   : > { %v1307_v18 = vsub.s32 (!%p1076_p5), 2, %v462_v9  ;;  %v579_v20 = vsub.s32 (!%p1076_p5), 6, %v462_v9  ;;  %v1312_v26 = vsub.s32 (!%p1076_p5), 3, %v462_v9  ;;  %v635_v36 = vsub.s32 (!%p1076_p5), 7, %v462_v9 }
  0x21   : > { %1083 = vmatmul.mubr.msk.bf16.vlgmr.msra.gmra.mrb[0].mxu0 (!%p1076_p5), %vm344_vm1, %v1150_v6  ;;  %1085 = vmatmul.mubr.msk.bf16.vlgmr.msra.gmra.mrb[0].mxu1 (!%p1076_p5), %vm344_vm1, %v1150_v6  ;;  %v464_v16 = vrot.slane (!%p1076_p5), %v1301_v11, %v463_v10  ;;  %v472_v17 = vrot.slane (!%p1076_p5), %v458_v12, %v463_v10  ;;  %v468_v19 = vrot.slane (!%p1076_p5), %v1301_v11, %v467_v13 }
  0x22   : > { %393 = vmatprep.mubr.bf16.mxu0 (!%p1076_p5), %v1219_v3  ;;  %446 = vmatprep.mubr.bf16.mxu1 (!%p1076_p5), %v1219_v3  ;;  %v476_v21 = vrot.slane (!%p1076_p5), %v458_v12, %v467_v13  ;;  %v520_v22 = vrot.slane (!%p1076_p5), %v1301_v11, %v519_v14  ;;  %v528_v23 = vrot.slane (!%p1076_p5), %v458_v12, %v519_v14 }
  0x23   : > { %v524_v24 = vrot.slane %v1301_v11, %v523_v15  ;;  %v532_v25 = vrot.slane %v458_v12, %v523_v15  ;;  %v484_v27 = vrot.slane %v464_v16, %v463_v10  ;;  %v492_v28 = vrot.slane %v472_v17, %v463_v10 }
  0x24   : > { %v576_v29 = vrot.slane %v1301_v11, %v1307_v18  ;;  %v488_v30 = vrot.slane %v468_v19, %v463_v10  ;;  %v584_v31 = vrot.slane %v458_v12, %v1307_v18  ;;  %v580_v32 = vrot.slane %v1301_v11, %v579_v20 }
  0x25   : > { %v1318_v33 = vrot.slane %v458_v12, %v579_v20  ;;  %v496_v34 = vrot.slane %v476_v21, %v463_v10  ;;  %v540_v35 = vrot.slane %v520_v22, %v519_v14  ;;  %v548_v39 = vrot.slane %v528_v23, %v519_v14 }
  0x26   : > { %v544_v40 = vrot.slane %v524_v24, %v519_v14  ;;  %v552_v41 = vrot.slane %v532_v25, %v519_v14  ;;  %v640_v42 = vrot.slane %v458_v12, %v1312_v26  ;;  %v596_v47 = vrot.slane %v576_v29, %v1307_v18 }
  0x27   : > { %v632_v48 = vrot.slane %v1301_v11, %v1312_v26  ;;  %v604_v52 = vrot.slane %v584_v31, %v1307_v18  ;;  %v600_v53 = vrot.slane %v580_v32, %v1307_v18  ;;  %v608_v54 = vrot.slane %v1318_v33, %v1307_v18 }
  0x28   : > { %v636_v60 = vrot.slane %v1301_v11, %v635_v36  ;;  %v660_v0 = vrot.slane %v640_v42, %v1312_v26  ;;  %v644_v4 = vrot.slane %v458_v12, %v635_v36 }
  0x29   : > { %1084 = vmatmul.mubr.msk.bf16.gmra.mrb[4].mxu0 %vm344_vm1, %v1151_v7  ;;  %1086 = vmatmul.mubr.msk.bf16.gmra.mrb[4].mxu1 %vm344_vm1, %v1151_v7  ;;  %v652_v13 = vrot.slane %v632_v48, %v1312_v26 }
  0x2a   : > { %v656_v14 = vrot.slane %v636_v60, %v1312_v26  ;;  %v664_v23 = vrot.slane %v644_v4, %v1312_v26 }
  0xf4   : > { %v385_v37 = vpop.f32.mrb[0].mxu0  ;;  %v438_v38 = vpop.f32.mrb[0].mxu1 }
  0xf5   : > { %v497_v43 = vmul.f32 %v484_v27, %v385_v37  ;;  %v499_v44 = vmul.f32 %v492_v28, %v438_v38  ;;  %v387_v45 = vpop.f32.mrb[1].mxu0  ;;  %v440_v46 = vpop.f32.mrb[1].mxu1 }
  0xf6   : > { %v498_v49 = vmul.f32 %v488_v30, %v387_v45  ;;  %v389_v50 = vpop.f32.mrb[2].mxu0  ;;  %v442_v51 = vpop.f32.mrb[2].mxu1  ;;  %v500_v56 = vmul.f32 %v496_v34, %v440_v46 }
  0xf7   : > { %v507_v55 = vmul.f32 %v497_v43, %v385_v37  ;;  %v553_v57 = vmul.f32 %v540_v35, %v389_v50  ;;  %v391_v58 = vpop.f32.mrb[3].mxu0  ;;  %v444_v59 = vpop.f32.mrb[3].mxu1  ;;  %v509_v1 = vmul.f32 %v499_v44, %v438_v38  ;;  %v555_v3 = vmul.f32 %v548_v39, %v442_v51 }
  0xf8   : > { %v501_v61 = vadd.f32 %v498_v49, %v497_v43  ;;  %v508_v62 = vmul.f32 %v498_v49, %v387_v45  ;;  %v554_v63 = vmul.f32 %v544_v40, %v391_v58  ;;  %v510_v9 = vmul.f32 %v500_v56, %v440_v46 }
  0xf9   : > { %v563_v2 = vmul.f32 %v553_v57, %v389_v50  ;;  %v556_v10 = vmul.f32 %v552_v41, %v444_v59  ;;  %v565_v24 = vmul.f32 %v555_v3, %v442_v51 }
  0xfa   : > { %v511_v5 = vadd.f32 %v508_v62, %v507_v55  ;;  %v557_v6 = vadd.f32 %v554_v63, %v553_v57  ;;  %v564_v7 = vmul.f32 %v554_v63, %v391_v58  ;;  %v502_v8 = vadd.f32 %v501_v61, %v499_v44 }
  0xfb   : > { %v566_v37 = vmul.f32 %v556_v10, %v444_v59 }
  0xfc   : > { %v567_v11 = vadd.f32 %v564_v7, %v563_v2  ;;  %v395_v15 = vpop.f32.mrb[4].mxu0  ;;  %v448_v16 = vpop.f32.mrb[4].mxu1  ;;  %v503_v17 = vadd.f32 %v502_v8, %v500_v56  ;;  %v558_v18 = vadd.f32 %v557_v6, %v555_v3  ;;  %v512_v19 = vadd.f32 %v511_v5, %v509_v1  ;;  %v685_v5 = vld [vmem:[#allocation2] sm:$0xff] }
  0xfd   : > { %v609_v20 = vmul.f32 %v596_v47, %v395_v15  ;;  %v611_v21 = vmul.f32 %v604_v52, %v448_v16  ;;  %v397_v22 = vpop.f32.mrb[5].mxu0  ;;  %v450_v12 = vpop.f32.mrb[5].mxu1 }
  0xfe   : > { %v610_v25 = vmul.f32 %v600_v53, %v397_v22  ;;  %v452_v27 = vpop.f32.mrb[6].mxu1  ;;  %504 = vadd.xlane.f32.xlu0 %v503_v17  ;;  %v399_v28 = vpop.f32.mrb[6].mxu0  ;;  %v559_v29 = vadd.f32 %v558_v18, %v556_v10  ;;  %v513_v30 = vadd.f32 %v512_v19, %v510_v9  ;;  %v612_v32 = vmul.f32 %v608_v54, %v450_v12  ;;  %v689_v10 = vld [vmem:[#allocation3] sm:$0xff] }
  0xff   : > { %v619_v31 = vmul.f32 %v609_v20, %v395_v15  ;;  %v667_v33 = vmul.f32 %v660_v0, %v452_v27  ;;  %v665_v34 = vmul.f32 %v652_v13, %v399_v28  ;;  %v401_v35 = vpop.f32.mrb[7].mxu0  ;;  %v454_v36 = vpop.f32.mrb[7].mxu1  ;;  %v621_v41 = vmul.f32 %v611_v21, %v448_v16 }
 0x100   : > { %v613_v38 = vadd.f32 %v610_v25, %v609_v20  ;;  %v620_v39 = vmul.f32 %v610_v25, %v397_v22  ;;  %v666_v40 = vmul.f32 %v656_v14, %v401_v35  ;;  %560 = vadd.xlane.f32.xlu1 %v559_v29  ;;  %v668_v42 = vmul.f32 %v664_v23, %v454_v36 }
 0x101   : > { %v675_v26 = vmul.f32 %v665_v34, %v399_v28  ;;  %v568_v43 = vadd.f32 %v567_v11, %v565_v24  ;;  %v622_v48 = vmul.f32 %v612_v32, %v450_v12  ;;  %v677_v49 = vmul.f32 %v667_v33, %v452_v27 }
 0x102   : > { %v623_v44 = vadd.f32 %v620_v39, %v619_v31  ;;  %v669_v45 = vadd.f32 %v666_v40, %v665_v34  ;;  %v676_v46 = vmul.f32 %v666_v40, %v401_v35  ;;  %514 = vadd.xlane.f32.xlu0 %v513_v30  ;;  %v614_v47 = vadd.f32 %v613_v38, %v611_v21 }
 0x103   : > { %v569_v50 = vadd.f32 %v568_v43, %v566_v37  ;;  %v678_v55 = vmul.f32 %v668_v42, %v454_v36 }
 0x104   : > { %v679_v51 = vadd.f32 %v676_v46, %v675_v26  ;;  %v615_v52 = vadd.f32 %v614_v47, %v612_v32  ;;  %v624_v53 = vadd.f32 %v623_v44, %v621_v41  ;;  %v670_v54 = vadd.f32 %v669_v45, %v667_v33 }
 0x105   : > { %570 = vadd.xlane.f32.xlu1 %v569_v50 }
 0x106   : > { %616 = vadd.xlane.f32.xlu0 %v615_v52  ;;  %v625_v56 = vadd.f32 %v624_v53, %v622_v48  ;;  %v671_v57 = vadd.f32 %v670_v54, %v668_v42  ;;  %v680_v58 = vadd.f32 %v679_v51, %v677_v49 }
 0x108   : > { %v681_v59 = vadd.f32 %v680_v58, %v678_v55 }
 0x109   : > { %626 = vadd.xlane.f32.xlu1 %v625_v56 }
 0x10a   : > { %672 = vadd.xlane.f32.xlu0 %v671_v57 }
 0x10d   : > { %682 = vadd.xlane.f32.xlu1 %v681_v59 }
 0x18b   : > { %v505_v60 = vpop.xlane.xlu0 %504 }
 0x18d   : > { %v561_v61 = vpop.xlane.xlu1 %560 }
 0x18e   : > { %v562_v1 = vadd.f32 %v561_v61, %v505_v60 }
 0x18f   : > { %v515_v62 = vpop.xlane.xlu0 %514 }
 0x192   : > { %v571_v63 = vpop.xlane.xlu1 %570 }
 0x193   : > { %v617_v0 = vpop.xlane.xlu0 %616  ;;  %v572_v4 = vadd.f32 %v571_v63, %v515_v62 }
 0x194   : > { %v618_v2 = vadd.f32 %v617_v0, %v562_v1 }
 0x196   : > { %v627_v3 = vpop.xlane.xlu1 %626 }
 0x197   : > { %v673_v6 = vpop.xlane.xlu0 %672  ;;  %v628_v8 = vadd.f32 %v627_v3, %v572_v4 }
 0x198   : > { %v674_v7 = vadd.f32 %v673_v6, %v618_v2 }
 0x19a   : > { %v686_v9 = vadd.f32 %v685_v5, %v674_v7  ;;  %v683_v13 = vpop.xlane.xlu1 %682 }
 0x19b   : > { %v684_v14 = vadd.f32 %v683_v13, %v628_v8 }
 0x19c   : > { %688 = vst.msk [vmem:[#allocation2] sm:$0xff] %vm687_vm2, %v686_v9 }
 0x19d   : > { %v690_v11 = vadd.f32 %v689_v10, %v684_v14 }
 0x19f   : > { %691 = vst.msk [vmem:[#allocation3] sm:$0xff] %vm687_vm2, %v690_v11 }
 0x1a0 PF: > { %693 = sbr.rel (!%p278_p4) target bundleno = 450 (0x1c2), region = 52  ;;  %v701_v12 = vld [vmem:[%s1403_s3] sm:$0xff] (%p278_p4)  ;;  %vm708_vm3 = vcmask (%p278_p4), 7168  }
 0x1a1   : > { %v705_v25 = vld [vmem:[%s1404_s4] sm:$0xff] (%p278_p4) }
 0x1a3   : > { %v694_v15 = vld [vmem:[#allocation2] sm:$0xff] (%p278_p4) }
 0x1a4   : > { %v695_v17 = vmul.f32 (%p278_p4), 0.0005202914, %v694_v15 }
 0x1a6   : > { %v696_v16 = vld [vmem:[#allocation3] sm:$0xff] (%p278_p4)  ;;  %v698_v19 = vmul.f32 (%p278_p4), %v695_v17, %v695_v17 }
 0x1a7   : > { %v697_v18 = vmul.f32 0.0005202914, %v696_v16 }
 0x1a9   : > { %v699_v20 = vsub.f32 %v697_v18, %v698_v19 }
 0x1ab   : > { %v700_v21 = vmax.f32 %v699_v20, 0.0 }
 0x1ad   : > { %v702_v22 = vadd.f32 1e-05, %v700_v21 }
 0x1af   : > { %1152 = vrsqrt.f32 %v702_v22 }
 0x1b9   : > { %v1153_v23 = vpop.eup %1152 }
 0x1ba   : > { %v704_v24 = vmul.f32 %v1153_v23, %v701_v12 }
 0x1bc   : > { %709 = vst.msk [vmem:[#allocation4] sm:$0xff] %vm708_vm3, %v704_v24  ;;  %711 = vst.msk [vmem:[#allocation4 + $0x8] sm:$0xff] %vm708_vm3, %v704_v24  ;;  %v706_v27 = vmul.f32 %v704_v24, %v695_v17 }
 0x1bd   : > { %713 = vst.msk [vmem:[#allocation4 + $0x10] sm:$0xff] %vm708_vm3, %v704_v24  ;;  %715 = vst.msk [vmem:[#allocation4 + $0x18] sm:$0xff] %vm708_vm3, %v704_v24 }
 0x1be   : > { %v707_v28 = vsub.f32 %v705_v25, %v706_v27 }
 0x1c0   : > { %710 = vst.msk [vmem:[#allocation5] sm:$0xff] %vm708_vm3, %v707_v28  ;;  %712 = vst.msk [vmem:[#allocation5 + $0x8] sm:$0xff] %vm708_vm3, %v707_v28 }
 0x1c1   : > { %714 = vst.msk [vmem:[#allocation5 + $0x10] sm:$0xff] %vm708_vm3, %v707_v28  ;;  %716 = vst.msk [vmem:[#allocation5 + $0x18] sm:$0xff] %vm708_vm3, %v707_v28 }
 0x1c2 PF: > { %p1087_p6 = scmp.ne.s32.totalorder %s1208_s18, 1 }
 0x1c3   : > { %v1156_v29 = vld [vmem:[%s1401_s1 + $0x4] ss:$16 sps:$4 sm:$0xff] (!%p1087_p6)   ;;  %v1158_v30 = vld [vmem:[%s1401_s1 + $0xc] ss:$16 sps:$4 sm:$0xff] (!%p1087_p6)   ;;  %v1220_v31 = vmov (!%p1087_p6), 0   ;;  %vm759_vm4 = vcmask (!%p1087_p6), 130048  }
 0x1c4   : > { %720 = sbr.rel (%p1087_p6) target bundleno = 686 (0x2ae), region = 56  ;;  %798 = vmatprep.mubr.bf16.mxu0 (!%p1087_p6), %v1220_v31  ;;  %851 = vmatprep.mubr.bf16.mxu1 (!%p1087_p6), %v1220_v31  ;;  %v1160_v32 = vld [vmem:[%s1401_s1] ss:$16 sps:$4 sm:$0xff] (!%p1087_p6)   ;;  %v1161_v33 = vld [vmem:[%s1401_s1 + $0x8] ss:$16 sps:$4 sm:$0xff] (!%p1087_p6)  }
 0x1c5   : > { %766 = vmatprep.subr.bf16.mxu0 (!%p1087_p6), %v1156_v29  ;;  %1155 = vset.pattern.permute.xlu1 (!%p1087_p6), %v1220_v31  ;;  %v1162_v34 = vld [vmem:[%s1400_s0] sm:$0xff] (!%p1087_p6)   ;;  %v872_v36 = vld [vmem:[#allocation4] sm:$0xff] (!%p1087_p6)  ;;  %v875_v37 = vld [vmem:[#allocation4 + $0x18] sm:$0xff] (!%p1087_p6) }
 0x1c6   : > { %819 = vmatprep.subr.bf16.mxu1 (!%p1087_p6), %v1158_v30  ;;  %1154 = vset.pattern.permute.xlu0 (!%p1087_p6), %v1220_v31  ;;  %v874_v35 = vld [vmem:[#allocation4 + $0x10] sm:$0xff] (!%p1087_p6)  ;;  %v873_v38 = vld [vmem:[#allocation4 + $0x8] sm:$0xff] (!%p1087_p6)  ;;  %v1163_v40 = vld [vmem:[%s1400_s0 + $0x8] sm:$0xff] (!%p1087_p6)  }
 0x1c7   : > { %767 = vmatpush1.bf16.msra.mxu0 (!%p1087_p6), %v1160_v32  ;;  %820 = vmatpush1.bf16.msra.mxu1 (!%p1087_p6), %v1161_v33  ;;  %v913_v39 = vld [vmem:[#allocation5 + $0x8] sm:$0xff] (!%p1087_p6)  ;;  %v912_v41 = vld [vmem:[#allocation5] sm:$0xff] (!%p1087_p6) }
 0x1c8   : > { %888 = vperm.xlu1 (!%p1087_p6), %1155, %v874_v35   ;;  %878 = vperm.xlu0 (!%p1087_p6), %1154, %v872_v36   ;;  %v915_v26 = vld [vmem:[#allocation5 + $0x18] sm:$0xff] (!%p1087_p6)  ;;  %v914_v42 = vld [vmem:[#allocation5 + $0x10] sm:$0xff] (!%p1087_p6) }
 0x1ca   : > { %1094 = vmatmul.mubr.msk.bf16.vlgmr.msra.gmra.mrb[0].mxu0 (!%p1087_p6), %vm759_vm4, %v1162_v34  ;;  %1096 = vmatmul.mubr.msk.bf16.vlgmr.msra.gmra.mrb[0].mxu1 (!%p1087_p6), %vm759_vm4, %v1162_v34 }
 0x1cb   : > { %808 = vmatprep.mubr.bf16.mxu0 %v1220_v31  ;;  %861 = vmatprep.mubr.bf16.mxu1 %v1220_v31 }
 0x1cc   : > { %893 = vperm.xlu1 %1155, %v875_v37   ;;  %883 = vperm.xlu0 %1154, %v873_v38  }
 0x1d0   : > { %923 = vperm.xlu1 %1155, %v913_v39   ;;  %918 = vperm.xlu0 %1154, %v912_v41  }
 0x1d2   : > { %1095 = vmatmul.mubr.msk.bf16.gmra.mrb[4].mxu0 %vm759_vm4, %v1163_v40  ;;  %1097 = vmatmul.mubr.msk.bf16.gmra.mrb[4].mxu1 %vm759_vm4, %v1163_v40 }
 0x1d4   : > { %933 = vperm.xlu1 %1155, %v915_v26   ;;  %928 = vperm.xlu0 %1154, %v914_v42  }
 0x247   : > { %v879_v43 = vpop.permute.xlu0 %878  ;;  %v889_v44 = vpop.permute.xlu1 %888 }
 0x24b   : > { %v884_v45 = vpop.permute.xlu0 %883  ;;  %v894_v46 = vpop.permute.xlu1 %893 }
 0x24f   : > { %v919_v47 = vpop.permute.xlu0 %918  ;;  %v924_v0 = vpop.permute.xlu1 %923 }
 0x253   : > { %v929_v9 = vpop.permute.xlu0 %928  ;;  %v934_v27 = vpop.permute.xlu1 %933 }
 0x29d   : > { %v800_v48 = vpop.f32.mrb[0].mxu0  ;;  %v853_v49 = vpop.f32.mrb[0].mxu1 }
 0x29e   : > { %v896_v50 = vmul.f32 %v879_v43, %v800_v48  ;;  %v898_v51 = vmul.f32 %v879_v43, %v853_v49  ;;  %v802_v52 = vpop.f32.mrb[1].mxu0  ;;  %v855_v53 = vpop.f32.mrb[1].mxu1 }
 0x29f   : > { %v897_v54 = vmul.f32 %v879_v43, %v802_v52  ;;  %v899_v55 = vmul.f32 %v879_v43, %v855_v53  ;;  %v804_v56 = vpop.f32.mrb[2].mxu0  ;;  %v857_v57 = vpop.f32.mrb[2].mxu1 }
 0x2a0   : > { %v936_v58 = vadd.f32 %v919_v47, %v896_v50  ;;  %v938_v59 = vadd.f32 %v919_v47, %v898_v51  ;;  %v900_v60 = vmul.f32 %v884_v45, %v804_v56  ;;  %v902_v61 = vmul.f32 %v884_v45, %v857_v57  ;;  %v806_v62 = vpop.f32.mrb[3].mxu0  ;;  %v859_v63 = vpop.f32.mrb[3].mxu1 }
 0x2a1   : > { %v937_v1 = vadd.f32 %v919_v47, %v897_v54  ;;  %v939_v2 = vadd.f32 %v919_v47, %v899_v55  ;;  %v901_v3 = vmul.f32 %v884_v45, %v806_v62  ;;  %v903_v4 = vmul.f32 %v884_v45, %v859_v63 }
 0x2a2   : > { %952 = vst [vmem:[#allocation6] sm:$0xff] %v936_v58  ;;  %954 = vst [vmem:[#allocation6 + $0x10] sm:$0xff] %v938_v59  ;;  %v940_v5 = vadd.f32 %v924_v0, %v900_v60  ;;  %v942_v6 = vadd.f32 %v924_v0, %v902_v61 }
 0x2a3   : > { %953 = vst [vmem:[#allocation6 + $0x8] sm:$0xff] %v937_v1  ;;  %955 = vst [vmem:[#allocation6 + $0x18] sm:$0xff] %v939_v2  ;;  %v941_v7 = vadd.f32 %v924_v0, %v901_v3  ;;  %v943_v8 = vadd.f32 %v924_v0, %v903_v4 }
 0x2a4   : > { %956 = vst [vmem:[#allocation6 + $0x20] sm:$0xff] %v940_v5  ;;  %958 = vst [vmem:[#allocation6 + $0x30] sm:$0xff] %v942_v6 }
 0x2a5   : > { %957 = vst [vmem:[#allocation6 + $0x28] sm:$0xff] %v941_v7  ;;  %959 = vst [vmem:[#allocation6 + $0x38] sm:$0xff] %v943_v8  ;;  %v810_v10 = vpop.f32.mrb[4].mxu0  ;;  %v863_v13 = vpop.f32.mrb[4].mxu1 }
 0x2a6   : > { %v904_v14 = vmul.f32 %v889_v44, %v810_v10  ;;  %v906_v11 = vmul.f32 %v889_v44, %v863_v13  ;;  %v812_v15 = vpop.f32.mrb[5].mxu0  ;;  %v865_v16 = vpop.f32.mrb[5].mxu1 }
 0x2a7   : > { %v905_v17 = vmul.f32 %v889_v44, %v812_v15  ;;  %v907_v18 = vmul.f32 %v889_v44, %v865_v16  ;;  %v814_v19 = vpop.f32.mrb[6].mxu0  ;;  %v867_v20 = vpop.f32.mrb[6].mxu1 }
 0x2a8   : > { %v944_v21 = vadd.f32 %v929_v9, %v904_v14  ;;  %v946_v22 = vadd.f32 %v929_v9, %v906_v11  ;;  %v908_v12 = vmul.f32 %v894_v46, %v814_v19  ;;  %v910_v23 = vmul.f32 %v894_v46, %v867_v20  ;;  %v816_v24 = vpop.f32.mrb[7].mxu0  ;;  %v869_v25 = vpop.f32.mrb[7].mxu1 }
 0x2a9   : > { %v945_v28 = vadd.f32 %v929_v9, %v905_v17  ;;  %v947_v29 = vadd.f32 %v929_v9, %v907_v18  ;;  %v909_v30 = vmul.f32 %v894_v46, %v816_v24  ;;  %v911_v31 = vmul.f32 %v894_v46, %v869_v25 }
 0x2aa   : > { %960 = vst [vmem:[#allocation6 + $0x40] sm:$0xff] %v944_v21  ;;  %962 = vst [vmem:[#allocation6 + $0x50] sm:$0xff] %v946_v22  ;;  %v948_v32 = vadd.f32 %v934_v27, %v908_v12  ;;  %v950_v33 = vadd.f32 %v934_v27, %v910_v23 }
 0x2ab   : > { %961 = vst [vmem:[#allocation6 + $0x48] sm:$0xff] %v945_v28  ;;  %963 = vst [vmem:[#allocation6 + $0x58] sm:$0xff] %v947_v29  ;;  %v949_v34 = vadd.f32 %v934_v27, %v909_v30  ;;  %v951_v35 = vadd.f32 %v934_v27, %v911_v31 }
 0x2ac   : > { %964 = vst [vmem:[#allocation6 + $0x60] sm:$0xff] %v948_v32  ;;  %966 = vst [vmem:[#allocation6 + $0x70] sm:$0xff] %v950_v33 }
 0x2ad   : > { %965 = vst [vmem:[#allocation6 + $0x68] sm:$0xff] %v949_v34  ;;  %967 = vst [vmem:[#allocation6 + $0x78] sm:$0xff] %v951_v35 }
 0x2ae PF: > { %p1366_p7 = scmp.eq.s32.totalorder %s1068_s21, 1  ;;  %s1221_s12 = smov [#allocation6]  }
 0x2af   : > { %s983_s13 = sshll.u32 %s1221_s12, 4  ;;  %s984_s13 = int_to_ptr.vmem [resolvable:$true] %s983_s13 }
 0x2b0   : > { %s1164_s14 = scalar_lea.vmem %s984_s13, 2048  ;;  %s1170_s15 = scalar_lea.vmem %s984_s13, 4096 }
 0x2b1   : > { %p1165_p8 = scmp.ne.s32.totalorder %s984_s13, %s1164_s14  ;;  %p1171_p11 = scmp.lt.s32.totalorder %s984_s13, %s984_s13 }
 0x2b2   : > { %p1172_p12 = scmp.lt.s32.totalorder %s1170_s15, %s1164_s14 }
 0x2b3   : > { %p1166_p9 = pnand %p1165_p8, %p1366_p7 }
 0x2b4   : > { %p1173_p13 = por %p1172_p12, %p1171_p11 }
 0x2b5   : > { %p1167_p10 = pneg %p1166_p9 }
 0x2b7   : > { %p1174_p0 = pnand %p1173_p13, %p1167_p10 }
 0x2b9   : > { %1177 = shalt.err (!%p1174_p0)
}
 0x2ba   : > { %s1178_s17 = scalar_lea.hbm %s1405_s5, 2048 }
 0x2bb   : > { %p1179_p1 = scmp.ne.s32.totalorder %s1405_s5, %s1178_s17  ;;  %p1184_p4 = scmp.lt.u32.totalorder %s1178_s17, %s1405_s5 }
 0x2bd   : > { %p1180_p2 = pnand %p1179_p1, %p1366_p7 }
 0x2bf   : > { %p1181_p3 = pneg %p1180_p2 }
 0x2c1   : > { %p1186_p5 = pnand %p1184_p4, %p1181_p3 }
 0x2c3   : > { %1189 = shalt.err (!%p1186_p5)
}
 0x2c4   : > { %s1222_s28 = smov 512   ;;  %s1223_s29 = smov 32  }
 0x2c5   : > { %1104 = dma.vmem_to_hbm [thread:$0]  (%p1366_p7), %s984_s13, 2048, %s1405_s5, [#allocation7], %s1222_s28, %s1222_s28, %s1223_s29  }
 0x2c6 PF: > { %p1112_p6 = scmp.ge.s32.totalorder %s1216_s20, 2  ;;  %p1113_p8 = scmp.eq.s32.totalorder %s1069_s22, 1 }
 0x2c8   : > { %p1108_p9 = pnand %p1113_p8, %p1112_p6 }
 0x2ca   : > { %1203 = dma.done.wait (!%p1108_p9), [#allocation7], 2048  }
 0x2cb   : > { %1205 = vsyncadd (!%p1108_p9), [#allocation7], 4294965248  ;;  %s18_s20 = sadd.s32 1, %s1216_s20   ;;  %s1407_s18 = smov %s1212_s19 }
 0x2cc   : > { %p15_p10 = scmp.ge.s32.totalorder %s18_s20, 4   ;;  %s1408_s19 = smov %s1410_s23 }
 0x2ce   :  { %17 = sbr.rel (!%p15_p10) target bundleno = 3 (0x3), region = 94 }
 0x2d5   :  { %1004 = vsyncpa [#allocation7], 1 }
 0x2d6   :  { %1006 = vsyncpa [#allocation7 + $0x1], 1 }

</bundles_post_ra>
